<compile_context>
chip_gen: v6e
topology: v6e:2x2x1
jax: 0.10.0
libtpu: 0.0.40
codegen_flags: <defaults>
</compile_context>

<pallas_src>
import jax
import jax.numpy as jnp
from jax.experimental import pallas as pl
from jax.experimental.pallas import tpu as pltpu

_LANE = 128


# ----------------------------------------------------------------------------
# Kernel bodies (elementwise, memory bound).
# ----------------------------------------------------------------------------
def _complex_relu_kernel(real_ref, img_ref, out_real_ref, out_img_ref):
    real = real_ref[...]
    img = img_ref[...]
    # mask = 1.0 * (real >= 0), applied to both parts (exact PyTorch semantics).
    mask = (real >= 0).astype(real.dtype)
    out_real_ref[...] = mask * real
    out_img_ref[...] = mask * img


def _complex_relu_stacked_kernel(xy_ref, out_ref):
    # xy_ref block is (2, tile_r, 128): [0] = real, [1] = img.
    real = xy_ref[0]
    img = xy_ref[1]
    mask = (real >= 0).astype(real.dtype)
    out_ref[0] = mask * real
    out_ref[1] = mask * img


# ----------------------------------------------------------------------------
# Small helpers.
# ----------------------------------------------------------------------------
def _cdiv(a, b):
    return -(-a // b)


def _round_up(x, m):
    return _cdiv(x, m) * m


def _sublane_pack(dtype):
    # vreg sublane packing height: 8 for 4-byte, 16 for 2-byte, 32 for 1-byte.
    itemsize = jnp.dtype(dtype).itemsize
    return max(8, 32 // itemsize)


def _complex_relu_jax(real, img):
    mask = (real >= 0).astype(real.dtype)
    return mask * real, mask * img


def _chip_config():
    """Per-generation streaming config.

    Returns (num_tensorcores, per_stream_buffer_bytes, vmem_limit_bytes|None,
             default_min_pallas_bytes).
    VMEM budget = 4 streams x 2 pipeline buffers x buffer_bytes (+ scratch).
    """
    kind = ""
    try:
        kind = jax.devices()[0].device_kind.lower()
    except Exception:
        pass
    if "v7" in kind or "7x" in kind:
        # 64 MiB VMEM/TC, ~3.2 TB/s HBM, 2 TCs: 3 MiB buffers -> 24 MiB of
        # stream buffers; raise the 32 MiB default scoped limit to 48 MiB for
        # Mosaic internal-scratch headroom.
        return 2, 3 << 20, 48 << 20, 4 << 20
    if "v6" in kind:
        # 128 MiB VMEM, 1 TC: 4 MiB buffers (32 MiB) -> raise limit to 64 MiB.
        return 1, 4 << 20, 64 << 20, 2 << 20
    if "v5p" in kind or "v4" in kind:
        # Megacore parts (2 TCs), generous VMEM.
        return 2, 2 << 20, 48 << 20, 2 << 20
    if "v5" in kind:
        # v5e: 16 MiB default scoped limit; 1.5 MiB buffers (12 MiB) fit with
        # headroom and are already near the bandwidth plateau at ~0.8 TB/s.
        return 1, (3 << 20) // 2, None, 2 << 20
    # Unknown backend: conservative.
    return 1, 1 << 20, None, 2 << 20


def _choose_tile_rows(rows, pack, target_rows, num_cores):
    """Tile height (rows of 128 lanes) for the streaming grid.

    Must be a multiple of the sublane packing (or equal the full dim), stay
    under the per-buffer VMEM target, and on 2-TC parts give an EVEN grid-step
    count so both cores get equal work.
    """
    if rows <= 2 * pack:
        return rows
    target_rows = max(pack, (target_rows // pack) * pack)
    if num_cores <= 1:
        # Single TC: a second grid step is pure overhead; only tile when the
        # full array would blow the VMEM budget.
        return rows if rows <= target_rows else target_rows
    # Two TCs: at least two steps, and an even count.
    tile = min(target_rows, _round_up(_cdiv(rows, 2), pack))
    steps = _cdiv(rows, tile)
    for _ in range(4):
        if steps <= 1 or steps % 2 == 0:
            break
        tile = max(pack, _round_up(_cdiv(rows, steps + 1), pack))
        steps = _cdiv(rows, tile)
    return tile


# ----------------------------------------------------------------------------
# pallas_call wrappers.
# ----------------------------------------------------------------------------
def _pallas_complex_relu_split(real2d, img2d, tile_r, vmem_limit):
    rows, lane = real2d.shape
    block = pl.BlockSpec((tile_r, lane), lambda i: (i, 0))
    return pl.pallas_call(
        _complex_relu_kernel,
        out_shape=(
            jax.ShapeDtypeStruct((rows, lane), real2d.dtype),
            jax.ShapeDtypeStruct((rows, lane), img2d.dtype),
        ),
        grid_spec=pltpu.PrefetchScalarGridSpec(
            num_scalar_prefetch=0,
            grid=(_cdiv(rows, tile_r),),
            in_specs=[block, block],
            out_specs=[block, block],
        ),
        compiler_params=pltpu.CompilerParams(
            dimension_semantics=("parallel",),
            vmem_limit_bytes=vmem_limit),
    )(real2d, img2d)


def _pallas_complex_relu_stacked(xy3d, tile_r, vmem_limit):
    _, rows, lane = xy3d.shape
    block = pl.BlockSpec((2, tile_r, lane), lambda i: (0, i, 0))
    return pl.pallas_call(
        _complex_relu_stacked_kernel,
        out_shape=jax.ShapeDtypeStruct(xy3d.shape, xy3d.dtype),
        grid_spec=pltpu.PrefetchScalarGridSpec(
            num_scalar_prefetch=0,
            grid=(_cdiv(rows, tile_r),),
            in_specs=[block],
            out_specs=block,
        ),
        compiler_params=pltpu.CompilerParams(
            dimension_semantics=("parallel",),
            vmem_limit_bytes=vmem_limit),
    )(xy3d)


# ----------------------------------------------------------------------------
# Public entry point.
# ----------------------------------------------------------------------------
def _stacked_path(xy, use_pallas, min_pallas_bytes,
                  num_cores, buffer_bytes, vmem_limit):
    """Single contiguous (2, ...) input -> 2 DMA streams instead of 4."""
    total = xy.size // 2
    itemsize = jnp.dtype(xy.dtype).itemsize
    want = use_pallas
    if want is None:
        want = (total * itemsize >= min_pallas_bytes) and (total % _LANE == 0)
    if (not want) or total == 0 or total % _LANE != 0:
        # Slices fuse into XLA's elementwise pass; no Pallas needed/possible.
        return _complex_relu_jax(xy[0], xy[1])

    rows = total // _LANE
    xy3d = xy.reshape(2, rows, _LANE)          # zero-copy view
    pack = _sublane_pack(xy.dtype)
    itemrow = _LANE * itemsize
    # A stacked block carries 2x the rows per buffer -> halve the row target
    # so the per-buffer byte budget stays the same.
    target_rows = max(pack, (buffer_bytes // itemrow) // 2 // pack * pack)
    tile_r = _choose_tile_rows(rows, pack, target_rows, num_cores)
    out3d = _pallas_complex_relu_stacked(xy3d, tile_r, vmem_limit)
    out = out3d.reshape(xy.shape)
    return out[0], out[1]


def complex_relu(real, img=None, *, use_pallas=None, min_pallas_bytes=None):
    """Pallas implementation of complex_relu_layer.forward.

    Accepts (real, img), a tuple `real=(real, img)` (like the PyTorch module's
    forward(real)), or a single stacked array of shape (2, ...).

    use_pallas: None -> auto (tiny / misaligned inputs stay on fused XLA),
    True/False -> force.
    """
    num_cores, buffer_bytes, vmem_limit, default_min = _chip_config()
    if min_pallas_bytes is None:
        min_pallas_bytes = default_min

    if img is None:
        if isinstance(real, (tuple, list)):
            real, img = real[0], real[1]
        elif real.ndim >= 1 and real.shape[0] == 2:
            # Contiguous stacked pair: use the 2-stream kernel (no jnp.stack).
            return _stacked_path(real, use_pallas, min_pallas_bytes,
                                 num_cores, buffer_bytes, vmem_limit)
        else:
            real, img = real[0], real[1]

    assert real.shape == img.shape, "real/img must have the same shape"
    assert real.dtype == img.dtype, "real/img must have the same dtype"

    orig_shape = real.shape
    total = real.size
    itemsize = jnp.dtype(real.dtype).itemsize

    want = use_pallas
    if want is None:
        # Auto: only take the Pallas path when it is free of wrapper copies
        # (128-divisible element count) and big enough to amortize launch.
        want = (total * itemsize >= min_pallas_bytes) and (total % _LANE == 0)
    if (not want) or total == 0 or total < _LANE:
        return _complex_relu_jax(real, img)

    pack = _sublane_pack(real.dtype)
    target_rows = max(pack, (buffer_bytes // (_LANE * itemsize)) // pack * pack)

    main = (total // _LANE) * _LANE
    rows = main // _LANE
    tile_r = _choose_tile_rows(rows, pack, target_rows, num_cores)

    flat_r = real.reshape(-1)
    flat_i = img.reshape(-1)

    if main == total:
        # Zero-copy lane-dense view; no pad, no un-pad slice.
        out_r2d, out_i2d = _pallas_complex_relu_split(
            flat_r.reshape(rows, _LANE), flat_i.reshape(rows, _LANE),
            tile_r, vmem_limit)
        return out_r2d.reshape(orig_shape), out_i2d.reshape(orig_shape)

    # Forced Pallas on a non-128-multiple size: kernel on the 128-aligned
    # prefix, tiny (<128 elem) tail in plain JAX.  (Auto mode never gets here.)
    out_r2d, out_i2d = _pallas_complex_relu_split(
        flat_r[:main].reshape(rows, _LANE), flat_i[:main].reshape(rows, _LANE),
        tile_r, vmem_limit)
    tail_r, tail_i = _complex_relu_jax(flat_r[main:], flat_i[main:])
    out_r = jnp.concatenate([out_r2d.reshape(-1), tail_r]).reshape(orig_shape)
    out_i = jnp.concatenate([out_i2d.reshape(-1), tail_i]).reshape(orig_shape)
    return out_r, out_i


def _reference(real, img):
    mask = (real >= 0).astype(real.dtype)
    return mask * real, mask * img


if __name__ == "__main__":
    key = jax.random.PRNGKey(0)
    k1, k2, k3, k4, k5, k6, k7, k8 = jax.random.split(key, 8)

    # 1) Small NCHW-like shape from the spec; force the Pallas path so the
    #    4-stream kernel is exercised below the auto-dispatch threshold.
    shape = (2, 4, 16, 16)
    real = jax.random.normal(k1, shape, dtype=jnp.float32)
    img = jax.random.normal(k2, shape, dtype=jnp.float32)
    out_real, out_img = complex_relu(real, img, use_pallas=True)
    jax.block_until_ready((out_real, out_img))
    ref_real, ref_img = _reference(real, img)
    assert jnp.allclose(out_real, ref_real)
    assert jnp.allclose(out_img, ref_img)

    # Tuple-input path (forward(real) with real=(real, img)).
    tr, ti = complex_relu((real, img), use_pallas=True)
    jax.block_until_ready((tr, ti))
    assert jnp.allclose(tr, ref_real)
    assert jnp.allclose(ti, ref_img)

    # 2) Stacked (2, ...) input -> 2-stream kernel (single in/out block).
    stacked = jnp.stack([real, img])           # test-setup copy only
    sr, si = complex_relu(stacked, use_pallas=True)
    jax.block_until_ready((sr, si))
    assert jnp.allclose(sr, ref_real)
    assert jnp.allclose(si, ref_img)

    # 3) Larger shape: exercises the big-tile / even-grid path.
    shape_big = (8, 16, 64, 64)
    real_b = jax.random.normal(k3, shape_big, dtype=jnp.float32)
    img_b = jax.random.normal(k4, shape_big, dtype=jnp.float32)
    ob_r, ob_i = complex_relu(real_b, img_b, use_pallas=True)
    jax.block_until_ready((ob_r, ob_i))
    rb_r, rb_i = _reference(real_b, img_b)
    assert jnp.allclose(ob_r, rb_r)
    assert jnp.allclose(ob_i, rb_i)

    # 4) Odd-ish shape (total is a multiple of 128): ragged last grid block.
    shape_odd = (3, 4, 17, 32)
    real_o = jax.random.normal(k5, shape_odd, dtype=jnp.float32)
    img_o = jax.random.normal(k6, shape_odd, dtype=jnp.float32)
    oo_r, oo_i = complex_relu(real_o, img_o, use_pallas=True)
    jax.block_until_ready((oo_r, oo_i))
    ro_r, ro_i = _reference(real_o, img_o)
    assert jnp.allclose(oo_r, ro_r)
    assert jnp.allclose(oo_i, ro_i)

    # 5) Non-128-multiple total (385 elems): forced -> prefix kernel + JAX
    #    tail; auto -> fused XLA fallback.  Both must be correct.
    shape_bad = (5, 7, 11)
    real_n = jax.random.normal(k7, shape_bad, dtype=jnp.float32)
    img_n = jax.random.normal(k8, shape_bad, dtype=jnp.float32)
    rn_r, rn_i = _reference(real_n, img_n)
    fn_r, fn_i = complex_relu(real_n, img_n, use_pallas=True)
    an_r, an_i = complex_relu(real_n, img_n)   # auto -> JAX fallback
    jax.block_until_ready((fn_r, fn_i, an_r, an_i))
    assert jnp.allclose(fn_r, rn_r) and jnp.allclose(fn_i, rn_i)
    assert jnp.allclose(an_r, rn_r) and jnp.allclose(an_i, rn_i)

    print("KERNEL_OK")
</pallas_src>

<mosaic_0001>
module attributes {stable_mosaic.version = 11 : i64} {
  func.func @_complex_relu_kernel(%arg0: i32, %arg1: memref<16x128xf32, #tpu.memory_space<vmem>>, %arg2: memref<16x128xf32, #tpu.memory_space<vmem>>, %arg3: memref<16x128xf32, #tpu.memory_space<vmem>>, %arg4: memref<16x128xf32, #tpu.memory_space<vmem>>) attributes {dimension_semantics = [#tpu.dimension_semantics<parallel>], iteration_bounds = array<i64: 1>, scalar_prefetch = 0 : i64, scratch_operands = 0 : i64, tpu.core_type = #tpu.core_type<tc>, window_params = [{transform_indices = @transform_0, window_bounds = array<i64: 16, 128>}, {transform_indices = @transform_1, window_bounds = array<i64: 16, 128>}, {transform_indices = @transform_2, window_bounds = array<i64: 16, 128>}, {transform_indices = @transform_3, window_bounds = array<i64: 16, 128>}]} {
    %c0 = arith.constant 0 : index
    %c0_0 = arith.constant 0 : index
    %0 = vector.load %arg1[%c0, %c0_0] : memref<16x128xf32, #tpu.memory_space<vmem>>, vector<16x128xf32>
    %c0_1 = arith.constant 0 : index
    %c0_2 = arith.constant 0 : index
    %1 = vector.load %arg2[%c0_1, %c0_2] : memref<16x128xf32, #tpu.memory_space<vmem>>, vector<16x128xf32>
    %cst = arith.constant 0.000000e+00 : f32
    %2 = vector.broadcast %cst : f32 to vector<16x128xf32>
    %3 = arith.cmpf oge, %0, %2 : vector<16x128xf32>
    %4 = arith.extui %3 : vector<16x128xi1> to vector<16x128xi32>
    %5 = arith.sitofp %4 : vector<16x128xi32> to vector<16x128xf32>
    %6 = arith.mulf %5, %0 : vector<16x128xf32>
    %c0_3 = arith.constant 0 : index
    %c0_4 = arith.constant 0 : index
    %7 = vector.load %arg3[%c0_3, %c0_4] : memref<16x128xf32, #tpu.memory_space<vmem>>, vector<16x128xf32>
    tpu.vector_store %arg3[%c0_3, %c0_4], %6 {strides = array<i32>} : memref<16x128xf32, #tpu.memory_space<vmem>>, vector<16x128xf32>,
    %8 = arith.mulf %5, %1 : vector<16x128xf32>
    %c0_5 = arith.constant 0 : index
    %c0_6 = arith.constant 0 : index
    %9 = vector.load %arg4[%c0_5, %c0_6] : memref<16x128xf32, #tpu.memory_space<vmem>>, vector<16x128xf32>
    tpu.vector_store %arg4[%c0_5, %c0_6], %8 {strides = array<i32>} : memref<16x128xf32, #tpu.memory_space<vmem>>, vector<16x128xf32>,
    return
  }
  func.func @transform_0(%arg0: i32) -> (i32, i32) {
    %c0_i32 = arith.constant 0 : i32
    %c0_i32_0 = arith.constant 0 : i32
    return %arg0, %c0_i32 : i32, i32
  }
  func.func @transform_1(%arg0: i32) -> (i32, i32) {
    %c0_i32 = arith.constant 0 : i32
    %c0_i32_0 = arith.constant 0 : i32
    return %arg0, %c0_i32 : i32, i32
  }
  func.func @transform_2(%arg0: i32) -> (i32, i32) {
    %c0_i32 = arith.constant 0 : i32
    %c0_i32_0 = arith.constant 0 : i32
    return %arg0, %c0_i32 : i32, i32
  }
  func.func @transform_3(%arg0: i32) -> (i32, i32) {
    %c0_i32 = arith.constant 0 : i32
    %c0_i32_0 = arith.constant 0 : i32
    return %arg0, %c0_i32 : i32, i32
  }
}

</mosaic_0001>

<bundles_post_ra>
// kernel: tpu_custom_call.1
= control target key start
LH: loop header
LB: loop body
LE: loop exit
PB: predicated region body
PF: predicated region fallthrough
CT: control target
= control target key end

     0   :  { %9 = vsyncpa [#allocation3], 0  ;;  %s243_s0 = inlined_call_operand.hbm [shape: f32[16,128], index: 0, kind: input, shape index: {}]   ;;  %s244_s1 = inlined_call_operand.hbm [shape: f32[16,128], index: 1, kind: input, shape index: {}]   ;;  %s245_s2 = inlined_call_operand.hbm [shape: f32[16,128], index: 2, kind: output, shape index: {0}]   ;;  %s246_s3 = inlined_call_operand.hbm [shape: f32[16,128], index: 3, kind: output, shape index: {1}]  }
   0x1   :  { %10 = vsyncpa [#allocation6], 0 }
   0x2   :  { %11 = vsyncpa [#allocation4], 0 }
   0x3   :  { %12 = vsyncpa [#allocation9], 0  ;;  %s192_s12 = smov [#allocation2]  }
   0x4   :  { %s18_s13 = sshll.u32 %s192_s12, 4  ;;  %s19_s13 = int_to_ptr.vmem [resolvable:$true] %s18_s13 }
   0x5   :  { %s112_s14 = scalar_lea.vmem %s19_s13, 256  ;;  %p117_p1 = scmp.lt.s32.totalorder %s19_s13, %s19_s13 }
   0x6   :  { %p113_p0 = scmp.ne.s32.totalorder %s19_s13, %s112_s14  ;;  %p118_p2 = scmp.lt.s32.totalorder %s112_s14, %s112_s14 }
   0x8   :  { %p119_p3 = por %p118_p2, %p117_p1 }
   0xa   :  { %p120_p4 = pnand %p119_p3, %p113_p0 }
   0xc   :  { %123 = shalt.err (!%p120_p4)
}
   0xd   :  { %s193_s15 = smov 128   ;;  %s194_s16 = smov 8  }
   0xe   :  { %24 = dma.hbm_to_vmem [thread:$0]  %s243_s0, 256, %s19_s13, [#allocation3], %s193_s15, %s193_s15, %s194_s16  }
   0xf   :  { %s195_s19 = smov [#allocation5]  }
  0x10   :  { %s30_s20 = sshll.u32 %s195_s19, 4  ;;  %s31_s20 = int_to_ptr.vmem [resolvable:$true] %s30_s20 }
  0x11   :  { %s132_s21 = scalar_lea.vmem %s31_s20, 256  ;;  %p137_p6 = scmp.lt.s32.totalorder %s31_s20, %s31_s20 }
  0x12   :  { %p133_p5 = scmp.ne.s32.totalorder %s31_s20, %s132_s21  ;;  %p138_p7 = scmp.lt.s32.totalorder %s132_s21, %s132_s21 }
  0x14   :  { %p139_p8 = por %p138_p7, %p137_p6 }
  0x16   :  { %p140_p9 = pnand %p139_p8, %p133_p5 }
  0x18   :  { %143 = shalt.err (!%p140_p9)
}
  0x19   :  { %36 = dma.hbm_to_vmem [thread:$0]  %s244_s1, 256, %s31_s20, [#allocation6], %s193_s15, %s193_s15, %s194_s16  }
  0x1a   :  { %184 = dma.done.wait [#allocation3], 256  }
  0x1b   :  { %185 = vsyncadd [#allocation3], 4294967040 }
  0x1c   :  { %186 = dma.done.wait [#allocation6], 256  }
  0x1d   :  { %187 = vsyncadd [#allocation6], 4294967040  ;;  %v43_v0 = vld [vmem:[#allocation2] sm:$0xff]  ;;  %v44_v1 = vld [vmem:[#allocation2 + $0x8] sm:$0xff]  ;;  %s196_s0 = smov [#allocation7]   ;;  %s197_s25 = smov [#allocation8]  }
  0x1e   :  { %v45_v2 = vld [vmem:[#allocation5] sm:$0xff]  ;;  %s66_s24 = sshll.u32 %s196_s0, 4  ;;  %vm47_vm0 = vcmp.ge.f32.partialorder %v43_v0, 0.0  ;;  %vm48_vm1 = vcmp.ge.f32.partialorder %v44_v1, 0.0  ;;  %v46_v3 = vld [vmem:[#allocation5 + $0x8] sm:$0xff]  ;;  %s78_s26 = sshll.u32 %s197_s25, 4  ;;  %s67_s24 = int_to_ptr.vmem [resolvable:$true] %s66_s24  ;;  %s79_s26 = int_to_ptr.vmem [resolvable:$true] %s78_s26 }
  0x1f   :  { %v198_v4 = vmov 0.0   ;;  %s144_s1 = scalar_lea.vmem %s67_s24, 256  ;;  %p149_p11 = scmp.lt.s32.totalorder %s67_s24, %s67_s24 }
  0x20   :  { %v95_v5 = vsel %vm47_vm0, 1.0, %v198_v4  ;;  %v96_v6 = vsel %vm48_vm1, 1.0, %v198_v4  ;;  %p145_p10 = scmp.ne.s32.totalorder %s67_s24, %s144_s1  ;;  %p150_p12 = scmp.lt.s32.totalorder %s144_s1, %s144_s1 }
  0x21   :  { %v53_v7 = vmul.f32 %v95_v5, %v43_v0  ;;  %v54_v8 = vmul.f32 %v96_v6, %v44_v1  ;;  %v57_v9 = vmul.f32 %v95_v5, %v45_v2  ;;  %v58_v10 = vmul.f32 %v96_v6, %v46_v3 }
  0x22   :  { %p151_p13 = por %p150_p12, %p149_p11 }
  0x23   :  { %55 = vst [vmem:[#allocation7] sm:$0xff] %v53_v7  ;;  %56 = vst [vmem:[#allocation7 + $0x8] sm:$0xff] %v54_v8 }
  0x24   :  { %59 = vst [vmem:[#allocation8] sm:$0xff] %v57_v9  ;;  %60 = vst [vmem:[#allocation8 + $0x8] sm:$0xff] %v58_v10  ;;  %p152_p0 = pnand %p151_p13, %p145_p10 }
  0x26   :  { %155 = shalt.err (!%p152_p0)
}
  0x27   :  { %72 = dma.vmem_to_hbm [thread:$0]  %s67_s24, 256, %s245_s2, [#allocation4], %s193_s15, %s193_s15, %s194_s16  }
  0x28   :  { %s164_s29 = scalar_lea.vmem %s79_s26, 256  ;;  %p169_p2 = scmp.lt.s32.totalorder %s79_s26, %s79_s26 }
  0x29   :  { %p165_p1 = scmp.ne.s32.totalorder %s79_s26, %s164_s29  ;;  %p170_p3 = scmp.lt.s32.totalorder %s164_s29, %s164_s29 }
  0x2b   :  { %p171_p4 = por %p170_p3, %p169_p2 }
  0x2d   :  { %p172_p5 = pnand %p171_p4, %p165_p1 }
  0x2f   :  { %175 = shalt.err (!%p172_p5)
}
  0x30   :  { %84 = dma.vmem_to_hbm [thread:$0]  %s79_s26, 256, %s246_s3, [#allocation9], %s193_s15, %s193_s15, %s194_s16  }
  0x31   :  { %188 = dma.done.wait [#allocation4], 256  }
  0x32   :  { %189 = vsyncadd [#allocation4], 4294967040 }
  0x33   :  { %190 = dma.done.wait [#allocation9], 256  }
  0x34   :  { %191 = vsyncadd [#allocation9], 4294967040 }
  0x35   :  { %91 = vsyncpa [#allocation3], 1 }
  0x36   :  { %92 = vsyncpa [#allocation6], 1 }
  0x37   :  { %93 = vsyncpa [#allocation4], 1 }
  0x38   :  { %94 = vsyncpa [#allocation9], 1 }

</bundles_post_ra>
